<compile_context>
chip_gen: v7x
topology: tpu7x:2x2x1
jax: 0.10.0
libtpu: 0.0.40
codegen_flags: <defaults>
</compile_context>

<pallas_src>
from functools import partial

import jax
import jax.numpy as jnp
from jax import lax
from jax.experimental import pallas as pl
from jax.experimental.pallas import tpu as pltpu

N = 32          # nodes per graph
IN_DIM = 16     # node feature dim
HID_DIM = 32    # hidden dim
HID2 = 2 * HID_DIM

# Parameter slab layout (rows x 64 lanes, f32):
#   rows [  0: 16)  enc_w1 (16,32)  lanes [0:32)
#   rows [ 16: 48)  enc_w2 (32,64)
#   rows [ 48: 80)  w_cat = [dec_w1 | sdec_w1] (32,64)
#   rows [ 80:112)  dec_w2 (32,16)  lanes [0:16)
#   row   112       enc_b1 (32)     lanes [0:32)
#   row   113       enc_b2 (64)
#   row   114       b_cat = [dec_b1 | sdec_b1] (64)
#   row   115       dec_b2 (16)     lanes [0:16)
#   rows [116:120)  zero pad (sublane multiple of 8)
W_ROWS = IN_DIM + 3 * HID_DIM          # 112
P_ROWS = W_ROWS + 8                    # 120

# Output slab layout (per graph, N x SLAB_W f32):
#   [0:32) z_mean | [32:64) z_log_std | [64:80) x_rec | [80:112) adj_rec | pad
OUT_COLS = HID2 + IN_DIM + N           # 112
SLAB_W = ((OUT_COLS + 127) // 128) * 128   # 128


# ---------------------------------------------------------------------------
# Fused Pallas kernel (one grid step == one graph): encoder (2 GCN layers) +
# reparameterization + attribute decoder (2 GCN layers) + structure decoder
# (1 GCN layer + hs hs^T), single lane-dense output slab.
# ---------------------------------------------------------------------------
def vgae_fused_kernel(a_ref, x_ref, eps_ref, p_ref, out_ref, *, mxu_dtype):
    f32 = jnp.float32

    # A_hat loaded once, cast once, reused for all four A_hat matmuls.
    a = a_ref[...].astype(mxu_dtype)

    # Weights: static, 8-aligned sublane slices of the parameter slab.
    w_e1 = p_ref[0:IN_DIM, 0:HID_DIM].astype(mxu_dtype)
    w_e2 = p_ref[IN_DIM:IN_DIM + HID_DIM, 0:HID2].astype(mxu_dtype)
    w_cat = p_ref[IN_DIM + HID_DIM:IN_DIM + 2 * HID_DIM, 0:HID2].astype(mxu_dtype)
    w_d2 = p_ref[IN_DIM + 2 * HID_DIM:W_ROWS, 0:IN_DIM].astype(mxu_dtype)

    # Biases: one aligned (8,64) load, then register-level row slices (f32).
    b_all = p_ref[W_ROWS:P_ROWS, :]
    b_e1 = b_all[0:1, 0:HID_DIM]
    b_e2 = b_all[1:2, 0:HID2]
    b_cat = b_all[2:3, 0:HID2]
    b_d2 = b_all[3:4, 0:IN_DIM]

    def gcn(h_mxu, w_mxu, b):
        # act-free GCN layer: A_hat @ (H @ W) + b, bf16 MXU / f32 accumulate.
        hw = jnp.dot(h_mxu, w_mxu, preferred_element_type=f32)
        out = jnp.dot(a, hw.astype(mxu_dtype), preferred_element_type=f32)
        return out + b

    # --- encoder: in_dim -> hid (relu) -> 2*hid ---
    h1 = jnp.maximum(gcn(x_ref[...].astype(mxu_dtype), w_e1, b_e1), 0.0)
    enc = gcn(h1.astype(mxu_dtype), w_e2, b_e2)
    z_mean = enc[:, :HID_DIM]
    z_log_std = enc[:, HID_DIM:]
    # reparameterization (z_sampling_), f32 VPU/EUP: z = mean + eps*exp(lstd)
    z = z_mean + eps_ref[...] * jnp.exp(z_log_std)

    # --- fused: attribute-decoder L1 (relu) + structure-decoder L1 (no act),
    #     one (N, 2*HID)=(32,64) matmul from the same z ---
    cat = gcn(z.astype(mxu_dtype), w_cat, b_cat)
    h2 = jnp.maximum(cat[:, :HID_DIM], 0.0)
    hs = cat[:, HID_DIM:]

    # --- attribute decoder L2: hid -> in_dim, no act ---
    x_rec = gcn(h2.astype(mxu_dtype), w_d2, b_d2)

    # --- structure decoder: adj = hs @ hs.T (NT contraction, no transpose
    #     copy; contraction on the last axis of both operands) ---
    hs_m = hs.astype(mxu_dtype)
    adj = lax.dot_general(hs_m, hs_m,
                          dimension_numbers=(((1,), (1,)), ((), ())),
                          preferred_element_type=f32)

    # Single lane-dense (N, 128) store (one unmasked vst slab + one DMA).
    pieces = [z_mean, z_log_std, x_rec, adj]
    if SLAB_W > OUT_COLS:
        pieces.append(jnp.zeros((N, SLAB_W - OUT_COLS), f32))
    out_ref[...] = jnp.concatenate(pieces, axis=-1).astype(out_ref.dtype)


# ---------------------------------------------------------------------------
# Wrapper: batched pallas_call + slab slicing
# ---------------------------------------------------------------------------
def vgae_forward(param_slab, a_hat, x, eps):
    """a_hat: [B,N,N], x: [B,N,IN_DIM], eps: [B,N,HID_DIM]."""
    B, n, _ = a_hat.shape
    assert n == N

    out = pl.pallas_call(
        partial(vgae_fused_kernel, mxu_dtype=jnp.bfloat16),
        out_shape=jax.ShapeDtypeStruct((B, n, SLAB_W), jnp.float32),
        grid=(B,),
        in_specs=[
            pl.BlockSpec((None, n, n), lambda b: (b, 0, 0)),         # A_hat
            pl.BlockSpec((None, n, IN_DIM), lambda b: (b, 0, 0)),    # x
            pl.BlockSpec((None, n, HID_DIM), lambda b: (b, 0, 0)),   # eps
            pl.BlockSpec((P_ROWS, HID2), lambda b: (0, 0)),          # param slab
        ],
        out_specs=pl.BlockSpec((None, n, SLAB_W), lambda b: (b, 0, 0)),
        compiler_params=pltpu.CompilerParams(
            dimension_semantics=("parallel",)),
    )(a_hat, x, eps, param_slab)

    z_mean = out[:, :, 0:HID_DIM]
    z_log_std = out[:, :, HID_DIM:HID2]
    x_rec = out[:, :, HID2:HID2 + IN_DIM]
    adj_rec = out[:, :, HID2 + IN_DIM:HID2 + IN_DIM + n]
    return z_mean, z_log_std, x_rec, adj_rec


# ---------------------------------------------------------------------------
# Plain-JAX glue (hoisted out of the jitted forward): adjacency normalization,
# parameter init and one-time parameter-slab packing.
# ---------------------------------------------------------------------------
def normalized_adjacency(edge_index, num_nodes):
    """Dense GCNConv normalization: D^-1/2 (A + I) D^-1/2 (unit edge weights)."""
    src, dst = edge_index[0], edge_index[1]
    a = jnp.zeros((num_nodes, num_nodes), jnp.float32).at[src, dst].set(1.0)
    a = jnp.minimum(a + jnp.eye(num_nodes, dtype=jnp.float32), 1.0)  # self-loops
    deg = a.sum(axis=1)
    dinv = jnp.where(deg > 0, 1.0 / jnp.sqrt(deg), 0.0)
    return a * dinv[:, None] * dinv[None, :]


def glorot(key, fin, fout):
    lim = (6.0 / (fin + fout)) ** 0.5
    return jax.random.uniform(key, (fin, fout), jnp.float32, -lim, lim)


def init_params(key, in_dim, hid_dim):
    ks = jax.random.split(key, 5)
    return {
        # encoder GCN: in_dim -> hid -> 2*hid
        "enc_w1": glorot(ks[0], in_dim, hid_dim),
        "enc_b1": jnp.zeros((hid_dim,), jnp.float32),
        "enc_w2": glorot(ks[1], hid_dim, 2 * hid_dim),
        "enc_b2": jnp.zeros((2 * hid_dim,), jnp.float32),
        # attribute decoder GCN: hid -> hid -> in_dim
        "dec_w1": glorot(ks[2], hid_dim, hid_dim),
        "dec_b1": jnp.zeros((hid_dim,), jnp.float32),
        "dec_w2": glorot(ks[3], hid_dim, in_dim),
        "dec_b2": jnp.zeros((in_dim,), jnp.float32),
        # structure decoder GCN (num_layers - 1 = 1 layer): hid -> hid
        "sdec_w1": glorot(ks[4], hid_dim, hid_dim),
        "sdec_b1": jnp.zeros((hid_dim,), jnp.float32),
    }


def pack_params(params):
    """Pack all weights and biases into one sublane-stacked (120, 64) slab."""
    slab = jnp.zeros((P_ROWS, HID2), jnp.float32)
    r = 0
    slab = slab.at[r:r + IN_DIM, :HID_DIM].set(params["enc_w1"]); r += IN_DIM
    slab = slab.at[r:r + HID_DIM, :HID2].set(params["enc_w2"]); r += HID_DIM
    w_cat = jnp.concatenate([params["dec_w1"], params["sdec_w1"]], axis=1)
    slab = slab.at[r:r + HID_DIM, :HID2].set(w_cat); r += HID_DIM
    slab = slab.at[r:r + HID_DIM, :IN_DIM].set(params["dec_w2"]); r += HID_DIM
    slab = slab.at[r, :HID_DIM].set(params["enc_b1"])
    slab = slab.at[r + 1, :HID2].set(params["enc_b2"])
    slab = slab.at[r + 2, :HID_DIM].set(params["dec_b1"])
    slab = slab.at[r + 2, HID_DIM:HID2].set(params["sdec_b1"])
    slab = slab.at[r + 3, :IN_DIM].set(params["dec_b2"])
    return slab


# TODO(synk): dropout is 0.0 and sigmoid_s=False in the reference config;
# nonzero dropout and sigmoid_s=True paths are not implemented. bf16 MXU
# operands (f32 accumulate) are used; swap mxu_dtype to jnp.float32 if exact
# f32-matmul parity with the PyTorch reference is required.

if __name__ == "__main__":
    key = jax.random.PRNGKey(0)
    k_param, k_x, k_eps = jax.random.split(key, 3)

    B = 8  # graphs per call (batched grid axis, "parallel" for megacore)

    params = init_params(k_param, IN_DIM, HID_DIM)
    param_slab = pack_params(params)           # once per model

    # deterministic ring graph (undirected -> both directions), [2, 2N]
    nodes = jnp.arange(N, dtype=jnp.int32)
    src = jnp.concatenate([nodes, (nodes + 1) % N])
    dst = jnp.concatenate([(nodes + 1) % N, nodes])
    edge_index = jnp.stack([src, dst], axis=0)

    # adjacency normalization hoisted out of the forward (static graph),
    # replicated across the batch
    a_hat = normalized_adjacency(edge_index, N)
    a_hat_b = jnp.broadcast_to(a_hat, (B, N, N))

    # deterministic node features + reparameterization noise per graph
    x = jax.random.normal(k_x, (B, N, IN_DIM), jnp.float32)
    eps = jax.random.normal(k_eps, (B, N, HID_DIM), jnp.float32)

    fwd = jax.jit(vgae_forward)
    z_mean, z_log_std, x_rec, adj_rec = fwd(param_slab, a_hat_b, x, eps)
    jax.block_until_ready((z_mean, z_log_std, x_rec, adj_rec))

    assert z_mean.shape == (B, N, HID_DIM)
    assert z_log_std.shape == (B, N, HID_DIM)
    assert x_rec.shape == (B, N, IN_DIM)
    assert adj_rec.shape == (B, N, N)
    for t in (z_mean, z_log_std, x_rec, adj_rec):
        assert bool(jnp.isfinite(t).all())
    print("KERNEL_OK")
</pallas_src>

<mosaic_0001>
module attributes {stable_mosaic.version = 11 : i64} {
  func.func @vgae_fused_kernel(%arg0: i32, %arg1: memref<1x32x32xf32, #tpu.memory_space<vmem>>, %arg2: memref<1x32x16xf32, #tpu.memory_space<vmem>>, %arg3: memref<1x32x32xf32, #tpu.memory_space<vmem>>, %arg4: memref<120x64xf32, #tpu.memory_space<vmem>>, %arg5: memref<1x32x128xf32, #tpu.memory_space<vmem>>) attributes {dimension_semantics = [#tpu.dimension_semantics<parallel>], iteration_bounds = array<i64: 8>, scalar_prefetch = 0 : i64, scratch_operands = 0 : i64, tpu.core_type = #tpu.core_type<tc>, window_params = [{transform_indices = @transform_0, window_bounds = array<i64: 1, 32, 32>}, {transform_indices = @transform_1, window_bounds = array<i64: 1, 32, 16>}, {transform_indices = @transform_2, window_bounds = array<i64: 1, 32, 32>}, {pipeline_mode = #tpu.pipeline_mode<synchronous>, transform_indices = @transform_3, window_bounds = array<i64: 120, 64>}, {transform_indices = @transform_4, window_bounds = array<i64: 1, 32, 128>}]} {
    %c0 = arith.constant 0 : index
    %c0_0 = arith.constant 0 : index
    %c0_1 = arith.constant 0 : index
    %0 = vector.load %arg1[%c0, %c0_0, %c0_1] : memref<1x32x32xf32, #tpu.memory_space<vmem>>, vector<1x32x32xf32>
    %1 = vector.shape_cast %0 : vector<1x32x32xf32> to vector<32x32xf32>
    %2 = arith.truncf %1 : vector<32x32xf32> to vector<32x32xbf16>
    %c0_2 = arith.constant 0 : index
    %c0_3 = arith.constant 0 : index
    %3 = vector.load %arg4[%c0_2, %c0_3] : memref<120x64xf32, #tpu.memory_space<vmem>>, vector<16x32xf32>
    %4 = arith.truncf %3 : vector<16x32xf32> to vector<16x32xbf16>
    %c16 = arith.constant 16 : index
    %c0_4 = arith.constant 0 : index
    %5 = vector.load %arg4[%c16, %c0_4] : memref<120x64xf32, #tpu.memory_space<vmem>>, vector<32x64xf32>
    %6 = arith.truncf %5 : vector<32x64xf32> to vector<32x64xbf16>
    %c48 = arith.constant 48 : index
    %c0_5 = arith.constant 0 : index
    %7 = vector.load %arg4[%c48, %c0_5] : memref<120x64xf32, #tpu.memory_space<vmem>>, vector<32x64xf32>
    %8 = arith.truncf %7 : vector<32x64xf32> to vector<32x64xbf16>
    %c80 = arith.constant 80 : index
    %c0_6 = arith.constant 0 : index
    %9 = vector.load %arg4[%c80, %c0_6] : memref<120x64xf32, #tpu.memory_space<vmem>>, vector<32x16xf32>
    %10 = arith.truncf %9 : vector<32x16xf32> to vector<32x16xbf16>
    %c112 = arith.constant 112 : index
    %c0_7 = arith.constant 0 : index
    %11 = vector.load %arg4[%c112, %c0_7] : memref<120x64xf32, #tpu.memory_space<vmem>>, vector<8x64xf32>
    %12 = vector.extract_strided_slice %11 {offsets = [0, 0], sizes = [1, 32], strides = [1, 1]} : vector<8x64xf32> to vector<1x32xf32>
    %13 = vector.extract_strided_slice %11 {offsets = [1, 0], sizes = [1, 64], strides = [1, 1]} : vector<8x64xf32> to vector<1x64xf32>
    %14 = vector.extract_strided_slice %11 {offsets = [2, 0], sizes = [1, 64], strides = [1, 1]} : vector<8x64xf32> to vector<1x64xf32>
    %15 = vector.extract_strided_slice %11 {offsets = [3, 0], sizes = [1, 16], strides = [1, 1]} : vector<8x64xf32> to vector<1x16xf32>
    %c0_8 = arith.constant 0 : index
    %c0_9 = arith.constant 0 : index
    %c0_10 = arith.constant 0 : index
    %16 = vector.load %arg2[%c0_8, %c0_9, %c0_10] : memref<1x32x16xf32, #tpu.memory_space<vmem>>, vector<1x32x16xf32>
    %17 = vector.shape_cast %16 : vector<1x32x16xf32> to vector<32x16xf32>
    %18 = arith.truncf %17 : vector<32x16xf32> to vector<32x16xbf16>
    %cst = arith.constant dense<0.000000e+00> : vector<32x32xf32>
    %19 = tpu.matmul %18, %4, %cst {dimension_numbers = #tpu.dot_dimension_numbers<[1], [0], [0], [1], [0, 0, 1, 1], [], []>} : vector<32x16xbf16>, vector<16x32xbf16>, vector<32x32xf32> -> vector<32x32xf32>
    %20 = arith.truncf %19 : vector<32x32xf32> to vector<32x32xbf16>
    %cst_11 = arith.constant dense<0.000000e+00> : vector<32x32xf32>
    %21 = tpu.matmul %2, %20, %cst_11 {dimension_numbers = #tpu.dot_dimension_numbers<[1], [0], [0], [1], [0, 0, 1, 1], [], []>} : vector<32x32xbf16>, vector<32x32xbf16>, vector<32x32xf32> -> vector<32x32xf32>
    %22 = vector.broadcast %12 : vector<1x32xf32> to vector<32x32xf32>
    %23 = arith.addf %21, %22 : vector<32x32xf32>
    %cst_12 = arith.constant 0.000000e+00 : f32
    %24 = vector.broadcast %cst_12 : f32 to vector<32x32xf32>
    %25 = arith.maximumf %23, %24 : vector<32x32xf32>
    %26 = arith.truncf %25 : vector<32x32xf32> to vector<32x32xbf16>
    %cst_13 = arith.constant dense<0.000000e+00> : vector<32x64xf32>
    %27 = tpu.matmul %26, %6, %cst_13 {dimension_numbers = #tpu.dot_dimension_numbers<[1], [0], [0], [1], [0, 0, 1, 1], [], []>} : vector<32x32xbf16>, vector<32x64xbf16>, vector<32x64xf32> -> vector<32x64xf32>
    %28 = arith.truncf %27 : vector<32x64xf32> to vector<32x64xbf16>
    %cst_14 = arith.constant dense<0.000000e+00> : vector<32x64xf32>
    %29 = tpu.matmul %2, %28, %cst_14 {dimension_numbers = #tpu.dot_dimension_numbers<[1], [0], [0], [1], [0, 0, 1, 1], [], []>} : vector<32x32xbf16>, vector<32x64xbf16>, vector<32x64xf32> -> vector<32x64xf32>
    %30 = vector.broadcast %13 : vector<1x64xf32> to vector<32x64xf32>
    %31 = arith.addf %29, %30 : vector<32x64xf32>
    %32 = vector.extract_strided_slice %31 {offsets = [0, 0], sizes = [32, 32], strides = [1, 1]} : vector<32x64xf32> to vector<32x32xf32>
    %33 = vector.extract_strided_slice %31 {offsets = [0, 32], sizes = [32, 32], strides = [1, 1]} : vector<32x64xf32> to vector<32x32xf32>
    %c0_15 = arith.constant 0 : index
    %c0_16 = arith.constant 0 : index
    %c0_17 = arith.constant 0 : index
    %34 = vector.load %arg3[%c0_15, %c0_16, %c0_17] : memref<1x32x32xf32, #tpu.memory_space<vmem>>, vector<1x32x32xf32>
    %35 = vector.shape_cast %34 : vector<1x32x32xf32> to vector<32x32xf32>
    %36 = math.exp %33 : vector<32x32xf32>
    %37 = arith.mulf %35, %36 : vector<32x32xf32>
    %38 = arith.addf %32, %37 : vector<32x32xf32>
    %39 = arith.truncf %38 : vector<32x32xf32> to vector<32x32xbf16>
    %cst_18 = arith.constant dense<0.000000e+00> : vector<32x64xf32>
    %40 = tpu.matmul %39, %8, %cst_18 {dimension_numbers = #tpu.dot_dimension_numbers<[1], [0], [0], [1], [0, 0, 1, 1], [], []>} : vector<32x32xbf16>, vector<32x64xbf16>, vector<32x64xf32> -> vector<32x64xf32>
    %41 = arith.truncf %40 : vector<32x64xf32> to vector<32x64xbf16>
    %cst_19 = arith.constant dense<0.000000e+00> : vector<32x64xf32>
    %42 = tpu.matmul %2, %41, %cst_19 {dimension_numbers = #tpu.dot_dimension_numbers<[1], [0], [0], [1], [0, 0, 1, 1], [], []>} : vector<32x32xbf16>, vector<32x64xbf16>, vector<32x64xf32> -> vector<32x64xf32>
    %43 = vector.broadcast %14 : vector<1x64xf32> to vector<32x64xf32>
    %44 = arith.addf %42, %43 : vector<32x64xf32>
    %45 = vector.extract_strided_slice %44 {offsets = [0, 0], sizes = [32, 32], strides = [1, 1]} : vector<32x64xf32> to vector<32x32xf32>
    %cst_20 = arith.constant 0.000000e+00 : f32
    %46 = vector.broadcast %cst_20 : f32 to vector<32x32xf32>
    %47 = arith.maximumf %45, %46 : vector<32x32xf32>
    %48 = vector.extract_strided_slice %44 {offsets = [0, 32], sizes = [32, 32], strides = [1, 1]} : vector<32x64xf32> to vector<32x32xf32>
    %49 = arith.truncf %47 : vector<32x32xf32> to vector<32x32xbf16>
    %cst_21 = arith.constant dense<0.000000e+00> : vector<32x16xf32>
    %50 = tpu.matmul %49, %10, %cst_21 {dimension_numbers = #tpu.dot_dimension_numbers<[1], [0], [0], [1], [0, 0, 1, 1], [], []>} : vector<32x32xbf16>, vector<32x16xbf16>, vector<32x16xf32> -> vector<32x16xf32>
    %51 = arith.truncf %50 : vector<32x16xf32> to vector<32x16xbf16>
    %cst_22 = arith.constant dense<0.000000e+00> : vector<32x16xf32>
    %52 = tpu.matmul %2, %51, %cst_22 {dimension_numbers = #tpu.dot_dimension_numbers<[1], [0], [0], [1], [0, 0, 1, 1], [], []>} : vector<32x32xbf16>, vector<32x16xbf16>, vector<32x16xf32> -> vector<32x16xf32>
    %53 = vector.broadcast %15 : vector<1x16xf32> to vector<32x16xf32>
    %54 = arith.addf %52, %53 : vector<32x16xf32>
    %55 = arith.truncf %48 : vector<32x32xf32> to vector<32x32xbf16>
    %cst_23 = arith.constant dense<0.000000e+00> : vector<32x32xf32>
    %56 = tpu.matmul %55, %55, %cst_23 {dimension_numbers = #tpu.dot_dimension_numbers<[1], [1], [0], [0], [0, 0, 1, 0], [], []>} : vector<32x32xbf16>, vector<32x32xbf16>, vector<32x32xf32> -> vector<32x32xf32>
    %cst_24 = arith.constant 0.000000e+00 : f32
    %57 = vector.broadcast %cst_24 : f32 to vector<32x16xf32>
    %58 = tpu.concatenate %32, %33, %54, %56, %57 in 1 : vector<32x32xf32>, vector<32x32xf32>, vector<32x16xf32>, vector<32x32xf32>, vector<32x16xf32> -> vector<32x128xf32>
    %c0_25 = arith.constant 0 : index
    %c0_26 = arith.constant 0 : index
    %c0_27 = arith.constant 0 : index
    %59 = vector.load %arg5[%c0_25, %c0_26, %c0_27] : memref<1x32x128xf32, #tpu.memory_space<vmem>>, vector<1x32x128xf32>
    %60 = vector.shape_cast %59 : vector<1x32x128xf32> to vector<32x128xf32>
    %61 = vector.shape_cast %58 : vector<32x128xf32> to vector<1x32x128xf32>
    tpu.vector_store %arg5[%c0_25, %c0_26, %c0_27], %61 {strides = array<i32>} : memref<1x32x128xf32, #tpu.memory_space<vmem>>, vector<1x32x128xf32>,
    return
  }
  func.func @transform_0(%arg0: i32) -> (i32, i32, i32) {
    %c0_i32 = arith.constant 0 : i32
    %c0_i32_0 = arith.constant 0 : i32
    %c0_i32_1 = arith.constant 0 : i32
    return %arg0, %c0_i32, %c0_i32_0 : i32, i32, i32
  }
  func.func @transform_1(%arg0: i32) -> (i32, i32, i32) {
    %c0_i32 = arith.constant 0 : i32
    %c0_i32_0 = arith.constant 0 : i32
    %c0_i32_1 = arith.constant 0 : i32
    return %arg0, %c0_i32, %c0_i32_0 : i32, i32, i32
  }
  func.func @transform_2(%arg0: i32) -> (i32, i32, i32) {
    %c0_i32 = arith.constant 0 : i32
    %c0_i32_0 = arith.constant 0 : i32
    %c0_i32_1 = arith.constant 0 : i32
    return %arg0, %c0_i32, %c0_i32_0 : i32, i32, i32
  }
  func.func @transform_3(%arg0: i32) -> (i32, i32) {
    %c0_i32 = arith.constant 0 : i32
    %c0_i32_0 = arith.constant 0 : i32
    %c0_i32_1 = arith.constant 0 : i32
    return %c0_i32, %c0_i32_0 : i32, i32
  }
  func.func @transform_4(%arg0: i32) -> (i32, i32, i32) {
    %c0_i32 = arith.constant 0 : i32
    %c0_i32_0 = arith.constant 0 : i32
    %c0_i32_1 = arith.constant 0 : i32
    return %arg0, %c0_i32, %c0_i32_0 : i32, i32, i32
  }
}

</mosaic_0001>

<bundles_post_ra>
// kernel: vgae_forward.1
= control target key start
LH: loop header
LB: loop body
LE: loop exit
PB: predicated region body
PF: predicated region fallthrough
CT: control target
= control target key end

     0   :  { %s1163_s15 = smov 0   ;;  %s1315_s0 = inlined_call_operand.vmem [shape: f32[8,32,32], index: 0, kind: input, shape index: {}]   ;;  %s1316_s1 = inlined_call_operand.vmem [shape: f32[8,32,16], index: 1, kind: input, shape index: {}]   ;;  %s1317_s2 = inlined_call_operand.vmem [shape: f32[8,32,32], index: 2, kind: input, shape index: {}]   ;;  %s1318_s3 = inlined_call_operand.vmem [shape: f32[120,64], index: 3, kind: input, shape index: {}]   ;;  %s1319_s4 = inlined_call_operand.vmem [shape: f32[8,32,128], index: 4, kind: output, shape index: {}]  }
   0x1 LB: > { %s964_s16 = sadd.s32 4294967295, %s1133_s15   ;;  %p968_p0 = scmp.ge.s32.totalorder %s1133_s15, 1  ;;  %s1133_s15 = sphi %s1163_s15, %s14_s15  }
   0x2   : > { %p182_p1 = scmp.lt.s32.totalorder %s1133_s15, 9 }
   0x4   : > { %p183_p2 = pnand %p968_p0, %p182_p1 }
   0x5   : > { %v245_v0 = vld [vmem:[%s1318_s3] sm:$0xff] (!%p183_p2)  ;;  %v246_v1 = vld [vmem:[%s1318_s3 + $0x8] sm:$0xff] (!%p183_p2)  ;;  %p218_p3 = scmp.lt.s32.totalorder (!%p183_p2), %s964_s16, 7  ;;  %vm273_vm0 = vcmask (!%p183_p2), 130048   ;;  %vm335_vm1 = vcmask (!%p183_p2), 261120   ;;  %v248_v21 = vld [vmem:[%s1318_s3 + $0x10] sm:$0xff] (!%p183_p2)  ;;  %v331_v27 = vlaneseq (!%p183_p2) }
   0x6   : > { %186 = sbr.rel (%p183_p2) target bundleno = 2060 (0x80c), region = 36  ;;  %v247_v2 = vpack.c.bf16 (!%p183_p2), %v246_v1, %v245_v0  ;;  %v249_v22 = vld [vmem:[%s1318_s3 + $0x18] sm:$0xff] (!%p183_p2)  ;;  %v250_v24 = vld [vmem:[%s1318_s3 + $0x20] sm:$0xff] (!%p183_p2)  ;;  %v251_v25 = vld [vmem:[%s1318_s3 + $0x28] sm:$0xff] (!%p183_p2)  ;;  %s1135_s22 = smov (!%p183_p2), 96   ;;  %vm871_vm2 = vcmask (!%p183_p2), 654336  }
   0x7   : > { %v252_v23 = vpack.c.bf16 (!%p183_p2), %v249_v22, %v248_v21  ;;  %v253_v26 = vpack.c.bf16 (!%p183_p2), %v251_v25, %v250_v24  ;;  %v1209_v28 = vshrl.u32 (!%p183_p2), %v331_v27, 7  ;;  %v1215_v30 = vld [vmem:[%s1318_s3 + $0x70] sm:$0xff] (!%p183_p2)  ;;  %v255_v1 = vld [vmem:[%s1318_s3 + $0x38] sm:$0xff] (!%p183_p2)  ;;  %s1136_s8 = smov (!%p183_p2), 80   ;;  %s1137_s9 = smov (!%p183_p2), 64   ;;  %vm866_vm3 = vcmask (!%p183_p2), 523264  }
   0x8   : > { %1036 = vmatprep.subr.bf16.mxu1 (!%p183_p2), %v247_v2  ;;  %v254_v0 = vld [vmem:[%s1318_s3 + $0x30] sm:$0xff] (!%p183_p2)  ;;  %vm876_vm4 = vcmask (!%p183_p2), 916480  }
   0x9   : > { %1037 = vmatpush3.bf16.msra.mxu1 (!%p183_p2), %v247_v2  ;;  %1050 = vmatprep.subr.bf16.mxu0 (!%p183_p2), %v252_v23  ;;  %v333_v29 = vsub.s32 (!%p183_p2), 0, %v1209_v28  ;;  %v456_v52 = vsub.s32 (!%p183_p2), 1, %v1209_v28 }
   0xa   : > { %1051 = vmatpush3.bf16.msra.mxu0 (!%p183_p2), %v252_v23 }
   0xb   : > { %1052 = vmatprep.subr.bf16.mxu0 (!%p183_p2), %v253_v26  ;;  %v334_v31 = vrot.slane (!%p183_p2), %v1215_v30, %v333_v29  ;;  %v457_v53 = vrot.slane (!%p183_p2), %v1215_v30, %v456_v52 }
   0xd   : > { %s1321_s16 = smov (!%p218_p3, %s964_s16), 7 }
   0xe   : > { %s1177_s21 = sshll.u32 %s1321_s16, 5  ;;  %1053 = vmatpush3.bf16.msra.mxu0 %v253_v26 }
   0xf   : > { %s227_s24 = scalar_lea.vmem %s1316_s1, %s1177_s21  ;;  %s222_s27 = scalar_lea.vmem %s1315_s0, %s1177_s21 }
  0x10   : > { %v267_v3 = vld [vmem:[%s227_s24] sm:$0xff]  ;;  %v268_v4 = vld [vmem:[%s227_s24 + $0x8] sm:$0xff]  ;;  %v269_v5 = vld [vmem:[%s227_s24 + $0x10] sm:$0xff]  ;;  %s232_s25 = scalar_lea.vmem %s1317_s2, %s1177_s21  ;;  %s237_s12 = scalar_lea.vmem %s1319_s4, %s1177_s21 }
  0x11   : > { %v271_v6 = vpack.c.bf16 %v268_v4, %v267_v3  ;;  %v270_v7 = vld [vmem:[%s227_s24 + $0x18] sm:$0xff]  ;;  %v239_v9 = vld [vmem:[%s222_s27] sm:$0xff]  ;;  %v240_v10 = vld [vmem:[%s222_s27 + $0x8] sm:$0xff]  ;;  %v258_v3 = vpack.c.bf16 %v255_v1, %v254_v0 }
  0x12   : > { %v272_v8 = vpack.c.bf16 %v270_v7, %v269_v5  ;;  %v1187_v11 = vpack.c.bf16 %v240_v10, %v239_v9  ;;  %v241_v18 = vld [vmem:[%s222_s27 + $0x10] sm:$0xff]  ;;  %v242_v19 = vld [vmem:[%s222_s27 + $0x18] sm:$0xff]  ;;  %v256_v5 = vld [vmem:[%s1318_s3 + $0x40] sm:$0xff] }
  0x13   : > { %1038 = vmatprep.mubr.msk.bf16.mxu1 %vm273_vm0, %v271_v6  ;;  %v1191_v20 = vpack.c.bf16 %v242_v19, %v241_v18  ;;  %1066 = vmatprep.subr.bf16.mxu0 %v258_v3  ;;  %v257_v6 = vld [vmem:[%s1318_s3 + $0x48] sm:$0xff] }
  0x14   : > { %1039 = vmatmul.mubr.msk.bf16.vlgmr.msra.gmra.mrb[0].mxu1 %vm273_vm0, %v272_v8  ;;  %v259_v7 = vpack.c.bf16 %v257_v6, %v256_v5  ;;  %v508_v18 = vld [vmem:[%s232_s25 + $0x8] sm:$0xff] }
  0x15   : > { %1046 = vmatprep.mubr.msk.bf16.mxu1 %vm335_vm1, %v1187_v11 }
  0xe7   : > { %v1040_v12 = vpop.f32.mrb[0].mxu1 }
  0xe8   : > { %v314_v13 = vpop.f32.mrb[1].mxu1 }
  0xe9   : > { %v1041_v14 = vpop.f32.mrb[2].mxu1 }
  0xea   : > { %v330_v15 = vpack.c.bf16 %v1041_v14, %v1040_v12  ;;  %v317_v16 = vpop.f32.mrb[3].mxu1  ;;  %v507_v14 = vld [vmem:[%s232_s25] sm:$0xff] }
  0xeb   : > { %v329_v17 = vpack.c.bf16 %v317_v16, %v314_v13  ;;  %v509_v16 = vld [vmem:[%s232_s25 + $0x10] sm:$0xff] }
  0xed   : > { %1042 = vmatprep.subr.bf16.mxu1 %v329_v17 }
  0xee   : > { %1043 = vmatpush3.bf16.msra.mxu1 %v329_v17  ;;  %v510_v17 = vld [vmem:[%s232_s25 + $0x18] sm:$0xff] }
  0xef   : > { %1044 = vmatprep.subr.bf16.mxu1 %v330_v15 }
  0xf2   : > { %1045 = vmatpush3.bf16.msra.mxu1 %v330_v15 }
  0xf5   : > { %1047 = vmatmul.mubr.msk.bf16.vlgmr.msra.gmra.mrb[4].mxu1 %vm335_vm1, %v1191_v20 }
  0xf6   : > { %1062 = vmatprep.mubr.msk.bf16.mxu1 %vm335_vm1, %v1187_v11 }
 0x1c8   : > { %v1048_v32 = vpop.f32.mrb[4].mxu1 }
 0x1c9   : > { %v385_v33 = vadd.f32 %v1048_v32, %v334_v31  ;;  %v376_v34 = vpop.f32.mrb[5].mxu1 }
 0x1ca   : > { %v377_v35 = vadd.f32 %v376_v34, %v334_v31  ;;  %v1049_v36 = vpop.f32.mrb[6].mxu1 }
 0x1cb   : > { %v388_v37 = vadd.f32 %v1049_v36, %v334_v31  ;;  %v379_v38 = vpop.f32.mrb[7].mxu1  ;;  %v393_v40 = vmax.f32 %v385_v33, 0.0 }
 0x1cc   : > { %v380_v39 = vadd.f32 %v379_v38, %v334_v31  ;;  %v391_v42 = vmax.f32 %v377_v35, 0.0 }
 0x1cd   : > { %v394_v41 = vmax.f32 %v388_v37, 0.0 }
 0x1ce   : > { %v392_v43 = vmax.f32 %v380_v39, 0.0 }
 0x1cf   : > { %v396_v44 = vpack.c.bf16 %v394_v41, %v393_v40  ;;  %v260_v40 = vld [vmem:[%s1318_s3 + $0x50] sm:$0xff]  ;;  %v261_v41 = vld [vmem:[%s1318_s3 + $0x58] sm:$0xff] }
 0x1d0   : > { %v395_v45 = vpack.c.bf16 %v392_v43, %v391_v42  ;;  %v264_v42 = vpack.c.bf16 %v261_v41, %v260_v40  ;;  %v262_v43 = vld [vmem:[%s1318_s3 + $0x60] sm:$0xff] }
 0x1d2   : > { %1054 = vmatprep.mubr.msk.bf16.mxu0 %vm335_vm1, %v395_v45  ;;  %v604_v45 = vsub.s32 2, %v1209_v28 }
 0x1d3   : > { %1055 = vmatmul.mubr.msk.bf16.vlgmr.msra.gmra.mrb[0].mxu0 %vm335_vm1, %v396_v44  ;;  %v263_v44 = vld [vmem:[%s1318_s3 + $0x68] sm:$0xff] }
 0x1d4   : > { %1067 = vmatpush3.bf16.msra.mxu0 %v258_v3 }
 0x1d5   : > { %1068 = vmatprep.subr.bf16.mxu0 %v259_v7 }
 0x1d8   : > { %1069 = vmatpush3.bf16.msra.mxu0 %v259_v7 }
 0x1d9   : > { %1082 = vmatprep.subr.bf16.mxu0 %v264_v42 }
 0x2a6   : > { %v1056_v46 = vpop.f32.mrb[0].mxu0 }
 0x2a7   : > { %v437_v47 = vpop.f32.mrb[1].mxu0 }
 0x2a8   : > { %v1057_v48 = vpop.f32.mrb[2].mxu0 }
 0x2a9   : > { %v453_v49 = vpack.c.bf16 %v1057_v48, %v1056_v46  ;;  %v440_v50 = vpop.f32.mrb[3].mxu0  ;;  %v605_v46 = vrot.slane %v1215_v30, %v604_v45 }
 0x2aa   : > { %v452_v51 = vpack.c.bf16 %v440_v50, %v437_v47 }
 0x2ac   : > { %1058 = vmatprep.subr.bf16.mxu1 %v452_v51 }
 0x2ad   : > { %1059 = vmatpush3.bf16.msra.mxu1 %v452_v51 }
 0x2ae   : > { %1060 = vmatprep.subr.bf16.mxu1 %v453_v49 }
 0x2b1   : > { %1061 = vmatpush3.bf16.msra.mxu1 %v453_v49 }
 0x2b4   : > { %1063 = vmatmul.mubr.msk.bf16.vlgmr.msra.gmra.mrb[8].mxu1 %vm335_vm1, %v1191_v20 }
 0x2b5   : > { %1078 = vmatprep.mubr.msk.bf16.mxu1 %vm335_vm1, %v1187_v11 }
 0x387   : > { %v1064_v54 = vpop.f32.mrb[8].mxu1 }
 0x388   : > { %v1226_v55 = vadd.f32 %v1064_v54, %v457_v53  ;;  %v492_v56 = vpop.f32.mrb[9].mxu1 }
 0x389   : > { %v1228_v57 = vadd.f32 %v492_v56, %v457_v53  ;;  %v1065_v58 = vpop.f32.mrb[10].mxu1 }
 0x38a   : > { %v515_v59 = vmul.f32 1.442695, %v1226_v55  ;;  %v1231_v60 = vadd.f32 %v1065_v58, %v457_v53  ;;  %v495_v61 = vpop.f32.mrb[11].mxu1 }
 0x38b   : > { %v511_v62 = vmul.f32 1.442695, %v1228_v57  ;;  %v1234_v63 = vadd.f32 %v495_v61, %v457_v53 }
 0x38c   : > { %1119 = vpow2.f32 %v515_v59  ;;  %v517_v2 = vmul.f32 1.442695, %v1231_v60 }
 0x38d   : > { %1121 = vpow2.f32 %v511_v62  ;;  %v513_v4 = vmul.f32 1.442695, %v1234_v63 }
 0x38e   : > { %1123 = vpow2.f32 %v517_v2 }
 0x38f   : > { %1125 = vpow2.f32 %v513_v4 }
 0x396   : > { %v1120_v8 = vpop.eup %1119 }
 0x397   : > { %v1122_v9 = vpop.eup %1121  ;;  %527 = vrot.lane.b32.xlu1 %v1120_v8, %s1135_s22 }
 0x398   : > { %523 = vrot.lane.b32.xlu0 %v1122_v9, %s1135_s22  ;;  %v1124_v10 = vpop.eup %1123 }
 0x399   : > { %v1126_v12 = vpop.eup %1125 }
 0x39b   : > { %529 = vrot.lane.b32.xlu1 %v1124_v10, %s1135_s22 }
 0x39c   : > { %525 = vrot.lane.b32.xlu0 %v1126_v12, %s1135_s22 }
 0x409   : > { %v528_v13 = vpop.permute.xlu1 %527 }
 0x40a   : > { %v524_v15 = vpop.permute.xlu0 %523  ;;  %v537_v22 = vmul.f32 %v528_v13, %v509_v16 }
 0x40b   : > { %v535_v19 = vmul.f32 %v524_v15, %v507_v14 }
 0x40c   : > { %v541_v31 = vadd.f32 %v537_v22, %v1226_v55 }
 0x40d   : > { %v530_v21 = vpop.permute.xlu1 %529  ;;  %v539_v27 = vadd.f32 %v535_v19, %v1228_v57 }
 0x40e   : > { %v538_v23 = vmul.f32 %v530_v21, %v510_v17  ;;  %v526_v24 = vpop.permute.xlu0 %525 }
 0x40f   : > { %v536_v25 = vmul.f32 %v526_v24, %v508_v18  ;;  %v720_v18 = vsub.s32 3, %v1209_v28 }
 0x410   : > { %v542_v26 = vadd.f32 %v538_v23, %v1231_v60 }
 0x411   : > { %v540_v29 = vadd.f32 %v536_v25, %v1234_v63  ;;  %v721_v19 = vrot.slane %v1215_v30, %v720_v18 }
 0x412   : > { %v544_v33 = vpack.c.bf16 %v542_v26, %v541_v31 }
 0x413   : > { %v543_v32 = vpack.c.bf16 %v540_v29, %v539_v27 }
 0x415   : > { %1070 = vmatprep.mubr.msk.bf16.mxu0 %vm335_vm1, %v543_v32 }
 0x416   : > { %1071 = vmatmul.mubr.msk.bf16.vlgmr.msra.gmra.mrb[4].mxu0 %vm335_vm1, %v544_v33 }
 0x417   : > { %1083 = vmatpush3.bf16.msra.mxu0 %v264_v42 }
 0x4e9   : > { %v1072_v34 = vpop.f32.mrb[4].mxu0 }
 0x4ea   : > { %v585_v35 = vpop.f32.mrb[5].mxu0 }
 0x4eb   : > { %v1073_v36 = vpop.f32.mrb[6].mxu0 }
 0x4ec   : > { %v601_v37 = vpack.c.bf16 %v1073_v36, %v1072_v34  ;;  %v588_v38 = vpop.f32.mrb[7].mxu0 }
 0x4ed   : > { %v600_v39 = vpack.c.bf16 %v588_v38, %v585_v35 }
 0x4ef   : > { %1074 = vmatprep.subr.bf16.mxu1 %v600_v39 }
 0x4f0   : > { %1075 = vmatpush3.bf16.msra.mxu1 %v600_v39 }
 0x4f1   : > { %1076 = vmatprep.subr.bf16.mxu1 %v601_v37 }
 0x4f4   : > { %1077 = vmatpush3.bf16.msra.mxu1 %v601_v37 }
 0x4f7   : > { %1079 = vmatmul.mubr.msk.bf16.vlgmr.msra.gmra.mrb[12].mxu1 %vm335_vm1, %v1191_v20 }
 0x4f8   : > { %1094 = vmatprep.mubr.msk.bf16.mxu1 %vm335_vm1, %v1187_v11  ;;  %v265_v11 = vpack.c.bf16 %v263_v44, %v262_v43 }
 0x4fa   : > { %1084 = vmatprep.subr.bf16.mxu0 %v265_v11 }
 0x4fb   : > { %1085 = vmatpush3.bf16.msra.mxu0 %v265_v11 }
 0x5ca   : > { %v1080_v47 = vpop.f32.mrb[12].mxu1 }
 0x5cb   : > { %v649_v48 = vadd.f32 %v1080_v47, %v605_v46  ;;  %v640_v49 = vpop.f32.mrb[13].mxu1 }
 0x5cc   : > { %v641_v50 = vadd.f32 %v640_v49, %v605_v46  ;;  %v1081_v51 = vpop.f32.mrb[14].mxu1 }
 0x5cd   : > { %v652_v52 = vadd.f32 %v1081_v51, %v605_v46  ;;  %v643_v53 = vpop.f32.mrb[15].mxu1  ;;  %v657_v56 = vmax.f32 %v649_v48, 0.0 }
 0x5ce   : > { %v644_v54 = vadd.f32 %v643_v53, %v605_v46  ;;  %v655_v61 = vmax.f32 %v641_v50, 0.0 }
 0x5cf   : > { %v658_v58 = vmax.f32 %v652_v52, 0.0  ;;  %v772_v59 = vpack.c.bf16 %v652_v52, %v649_v48 }
 0x5d0   : > { %v656_v62 = vmax.f32 %v644_v54, 0.0  ;;  %v771_v0 = vpack.c.bf16 %v644_v54, %v641_v50 }
 0x5d1   : > { %v660_v1 = vpack.c.bf16 %v658_v58, %v657_v56  ;;  %777 = vrot.lane.b32.xlu1 %v772_v59, %s1135_s22 }
 0x5d2   : > { %v659_v2 = vpack.c.bf16 %v656_v62, %v655_v61  ;;  %775 = vrot.lane.b32.xlu0 %v771_v0, %s1135_s22 }
 0x5d4   : > { %1086 = vmatprep.mubr.msk.bf16.mxu0 %vm335_vm1, %v659_v2 }
 0x5d5   : > { %1087 = vmatmul.mubr.msk.bf16.vlgmr.msra.gmra.mrb[8].mxu0 %vm335_vm1, %v660_v1 }
 0x643   : > { %v778_v5 = vpop.permute.xlu1 %777 }
 0x644   : > { %v776_v3 = vpop.permute.xlu0 %775  ;;  %v783_v6 = vsel %vm335_vm1, %v778_v5, 0 }
 0x645   : > { %1106 = vmatprep.subr.msk.bf16.mxu0 %vm335_vm1, %v776_v3  ;;  %1102 = vmatprep.mubr.msk.bf16.mxu0 %vm335_vm1, %v776_v3  ;;  %v780_v4 = vsel %vm335_vm1, %v776_v3, 0 }
 0x646   : > { %1099 = vmatpush3.bf16.xpose.msra.mxu0 %v780_v4 }
 0x647   : > { %1107 = vmatprep.subr.msk.bf16.mxu0 %vm335_vm1, %v778_v5 }
 0x64e   : > { %1101 = vmatpush3.bf16.xpose.msra.mxu0 %v783_v6 }
 0x655   : > { %1103 = vmatmul.mubr.msk.bf16.vlgmr.msra.gmra.mrb[12].mxu0 %vm335_vm1, %v778_v5 }
 0x6a8   : > { %v1088_v7 = vpop.f32.mrb[8].mxu0 }
 0x6a9   : > { %v701_v8 = vpop.f32.mrb[9].mxu0 }
 0x6aa   : > { %v1089_v9 = vpop.f32.mrb[10].mxu0 }
 0x6ab   : > { %v717_v10 = vpack.c.bf16 %v1089_v9, %v1088_v7  ;;  %v704_v12 = vpop.f32.mrb[11].mxu0 }
 0x6ac   : > { %v716_v13 = vpack.c.bf16 %v704_v12, %v701_v8 }
 0x6ae   : > { %1090 = vmatprep.subr.bf16.mxu1 %v716_v13 }
 0x6af   : > { %1091 = vmatpush3.bf16.msra.mxu1 %v716_v13 }
 0x6b0   : > { %1092 = vmatprep.subr.bf16.mxu1 %v717_v10 }
 0x6b3   : > { %1093 = vmatpush3.bf16.msra.mxu1 %v717_v10 }
 0x6b6   : > { %1095 = vmatmul.mubr.msk.bf16.vlgmr.msra.gmra.mrb[16].mxu1 %vm335_vm1, %v1191_v20 }
 0x728   : > { %v1104_v14 = vpop.f32.mrb[12].mxu0 }
 0x729   : > { %v819_v15 = vpop.f32.mrb[13].mxu0 }
 0x72a   : > { %854 = vrot.lane.b32.xlu0 %v819_v15, %s1136_s8  ;;  %v1105_v16 = vpop.f32.mrb[14].mxu0 }
 0x72b   : > { %v822_v17 = vpop.f32.mrb[15].mxu0 }
 0x72c   : > { %856 = vrot.lane.b32.xlu1 %v822_v17, %s1136_s8 }
 0x789   : > { %v1096_v21 = vpop.f32.mrb[16].mxu1 }
 0x78a   : > { %v765_v22 = vadd.f32 %v1096_v21, %v721_v19  ;;  %v756_v23 = vpop.f32.mrb[17].mxu1 }
 0x78b   : > { %v1097_v24 = vpop.f32.mrb[18].mxu1  ;;  %v757_v20 = vadd.f32 %v756_v23, %v721_v19 }
 0x78c   : > { %v768_v25 = vadd.f32 %v1097_v24, %v721_v19  ;;  %842 = vrot.lane.b32.xlu0 %v765_v22, %s1137_s9  ;;  %v759_v26 = vpop.f32.mrb[19].mxu1 }
 0x78d   : > { %v760_v27 = vadd.f32 %v759_v26, %v721_v19 }
 0x78e   : > { %844 = vrot.lane.b32.xlu1 %v768_v25, %s1137_s9 }
 0x790   : > { %838 = vrot.lane.b32.xlu0 %v757_v20, %s1137_s9 }
 0x792   : > { %840 = vrot.lane.b32.xlu1 %v760_v27, %s1137_s9 }
 0x794   : > { %858 = vrot.lane.b32.xlu0 %v1104_v14, %s1136_s8 }
 0x796   : > { %860 = vrot.lane.b32.xlu1 %v1105_v16, %s1136_s8 }
 0x79c   : > { %v855_v29 = vpop.permute.xlu0 %854 }
 0x79e   : > { %v857_v28 = vpop.permute.xlu1 %856 }
 0x7fe   : > { %v843_v31 = vpop.permute.xlu0 %842 }
 0x7ff   : > { %v869_v38 = vsel %vm866_vm3, %v1226_v55, %v843_v31 }
 0x800   : > { %v845_v30 = vpop.permute.xlu1 %844 }
 0x801   : > { %v870_v43 = vsel %vm866_vm3, %v1231_v60, %v845_v30 }
 0x802   : > { %v839_v32 = vpop.permute.xlu0 %838 }
 0x803   : > { %v867_v33 = vsel %vm866_vm3, %v1228_v57, %v839_v32 }
 0x804   : > { %v872_v34 = vsel %vm871_vm2, %v867_v33, %v855_v29  ;;  %v841_v35 = vpop.permute.xlu1 %840 }
 0x805   : > { %v877_v36 = vsel %vm876_vm4, %v872_v34, 0.0  ;;  %v868_v37 = vsel %vm866_vm3, %v1234_v63, %v841_v35 }
 0x806   : > { %881 = vst [vmem:[%s237_s12] sm:$0xff] %v877_v36  ;;  %v873_v39 = vsel %vm871_vm2, %v868_v37, %v857_v28  ;;  %v859_v40 = vpop.permute.xlu0 %858 }
 0x807   : > { %v878_v41 = vsel %vm876_vm4, %v873_v39, 0.0  ;;  %v874_v42 = vsel %vm871_vm2, %v869_v38, %v859_v40 }
 0x808   : > { %882 = vst [vmem:[%s237_s12 + $0x8] sm:$0xff] %v878_v41  ;;  %v879_v57 = vsel %vm876_vm4, %v874_v42, 0.0  ;;  %v861_v44 = vpop.permute.xlu1 %860 }
 0x809   : > { %883 = vst [vmem:[%s237_s12 + $0x10] sm:$0xff] %v879_v57  ;;  %v875_v11 = vsel %vm871_vm2, %v870_v43, %v861_v44 }
 0x80a   : > { %v880_v63 = vsel %vm876_vm4, %v875_v11, 0.0 }
 0x80b   : > { %884 = vst [vmem:[%s237_s12 + $0x18] sm:$0xff] %v880_v63 }
 0x80c PF: > { %s14_s15 = sadd.s32 1, %s1133_s15  }
 0x80d   : > { %p11_p4 = scmp.ge.s32.totalorder %s14_s15, 10  }
 0x80f   :  { %13 = sbr.rel (!%p11_p4) target bundleno = 1 (0x1), region = 72 }

</bundles_post_ra>
